<compile_context>
chip_gen: v7x
topology: tpu7x:2x2x1
jax: 0.10.0
libtpu: 0.0.40
codegen_flags: <defaults>
</compile_context>

<pallas_src>
import functools

import jax
import jax.numpy as jnp
from jax.experimental import pallas as pl
from jax.experimental.pallas import tpu as pltpu

LANES = 128


def _round_up(x, m):
    return ((x + m - 1) // m) * m


# ----------------------------------------------------------------------------
# Weighted-BCE stats kernel (node-overlap loss)
# ----------------------------------------------------------------------------
def _weighted_bce_stats_kernel(score_ref, gt_ref, sums_ref,
                               acc_cnt, acc_pos, acc_tot):
    i = pl.program_id(0)

    @pl.when(i == 0)
    def _init():
        acc_cnt[...] = jnp.zeros_like(acc_cnt)
        acc_pos[...] = jnp.zeros_like(acc_pos)
        acc_tot[...] = jnp.zeros_like(acc_tot)

    s = score_ref[...].astype(jnp.float32)
    g = gt_ref[...]                              # int8, values in {0, 1}
    is_pos = g > 0

    # Single-log BCE (exact because labels are binary):
    #   p = s for positives, 1 - s for negatives; loss = -clamp(log p, -100)
    # (matches PyTorch's binary_cross_entropy log clamp at -100).
    # NOTE: no ragged-tail mask -- _bce_stats pads with ZEROS, and a padded
    # element (score=0, gt=0) gives p=1 -> loss=0, posf=0, i.e. contributes
    # nothing to any of the three sums.
    p = jnp.where(is_pos, s, 1.0 - s)
    loss = -jnp.maximum(jnp.log(p), -100.0)
    posf = is_pos.astype(jnp.float32)

    # Narrow (1,128) accumulators: each block is sublane-reduced on the XLU
    # and only the (1,128) partials are read/modified/written (cuts
    # accumulator store traffic ~block_rows x vs full-block accumulators).
    acc_cnt[...] += jnp.sum(posf, axis=0, keepdims=True)         # sum(gt)
    acc_pos[...] += jnp.sum(posf * loss, axis=0, keepdims=True)  # sum(pos loss)
    acc_tot[...] += jnp.sum(loss, axis=0, keepdims=True)         # sum(all loss)

    @pl.when(i == pl.num_programs(0) - 1)
    def _finalize():
        s_gt = jnp.sum(acc_cnt[...])
        s_pos = jnp.sum(acc_pos[...])
        s_tot = jnp.sum(acc_tot[...])
        lane = jax.lax.broadcasted_iota(jnp.int32, (1, LANES), 1)
        sums_ref[...] = jnp.where(lane == 0, s_gt,
                        jnp.where(lane == 1, s_pos,
                        jnp.where(lane == 2, s_tot, 0.0)))


def _bce_stats(score, gt_labels_i8, *, max_block_rows=2048):
    """One pipelined pass -> (sum_gt, sum_pos_loss, sum_total_loss)."""
    n = score.shape[0]
    assert n > 0, "empty score vector"
    rows = pl.cdiv(n, LANES)
    # int8 tiles pack 32 sublanes -> keep block rows a multiple of 32, and
    # make the padded row count an exact multiple of the block.
    block_rows = min(max_block_rows, _round_up(rows, 32))
    rows_p = _round_up(rows, block_rows)
    pad = rows_p * LANES - n
    # INVARIANT: padding MUST be zeros (score=0, gt=0). The kernel has no
    # tail mask and relies on zero padding contributing exactly zero.
    if pad:
        score = jnp.pad(score, (0, pad))
        gt_labels_i8 = jnp.pad(gt_labels_i8, (0, pad))
    s2 = score.reshape(rows_p, LANES)
    g2 = gt_labels_i8.reshape(rows_p, LANES)
    n_blocks = rows_p // block_rows

    sums = pl.pallas_call(
        _weighted_bce_stats_kernel,
        out_shape=jax.ShapeDtypeStruct((1, LANES), jnp.float32),
        grid_spec=pltpu.PrefetchScalarGridSpec(
            num_scalar_prefetch=0,
            grid=(n_blocks,),
            in_specs=[
                pl.BlockSpec((block_rows, LANES), lambda i: (i, 0)),
                pl.BlockSpec((block_rows, LANES), lambda i: (i, 0)),
            ],
            out_specs=pl.BlockSpec((1, LANES), lambda i: (0, 0)),
            scratch_shapes=[pltpu.VMEM((1, LANES), jnp.float32)] * 3,
        ),
        compiler_params=pltpu.CompilerParams(
            dimension_semantics=("arbitrary",)),
    )(s2, g2)
    return sums[0, 0], sums[0, 1], sums[0, 2]


def node_overlap_loss(output_dict):
    """JAX/Pallas equivalent of node_overlap_Loss.forward (weighted BCE)."""
    gt_node_corr_indices = output_dict['gt_node_corr_indices']
    score = output_dict['score']
    n_pos = output_dict['pos_points_c'].shape[0]
    n_anc = output_dict['anc_points_c'].shape[0]

    # gt labels are binary -> ship them as int8 (1 B/elem instead of 4 B).
    pos_gt = jnp.zeros((n_pos,), jnp.int8).at[gt_node_corr_indices[:, 0]].set(1)
    anc_gt = jnp.zeros((n_anc,), jnp.int8).at[gt_node_corr_indices[:, 1]].set(1)
    gt = jnp.concatenate([pos_gt, anc_gt])

    sum_gt, sum_pos, sum_tot = _bce_stats(score, gt)
    sum_neg = sum_tot - sum_pos
    n = jnp.float32(gt.shape[0])
    w_neg = sum_gt / n
    w_pos = 1.0 - w_neg
    return (w_pos * sum_pos + w_neg * sum_neg) / n


# ----------------------------------------------------------------------------
# PIR (evaluate_coarse): fused-key membership test, Q-tiled
# ----------------------------------------------------------------------------
def _coarse_precision_kernel(qk_ref, gk_ref, out_ref, acc_ref):
    i = pl.program_id(0)

    @pl.when(i == 0)
    def _init():
        acc_ref[...] = jnp.zeros_like(acc_ref)

    # (QB,1) == (1,G) broadcast compare on the pre-fused int32 keys.  A query
    # counts as correct iff it matches any overlap-masked gt key (sentinel
    # keys -1 / -2 never match).  Equivalent to gathering from the binary gt
    # correspondence map.
    match = qk_ref[...] == gk_ref[...]                              # (QB, G)
    # TODO(synk): jnp.any(match, axis=1) would drop this single f32 cast once
    #             bool lane-reductions are confirmed on the target Mosaic.
    hits = jnp.max(match.astype(jnp.float32), axis=1, keepdims=True)  # (QB, 1)
    acc_ref[...] += jnp.sum(hits)

    @pl.when(i == pl.num_programs(0) - 1)
    def _finalize():
        out_ref[...] = acc_ref[...]


def _coarse_precision(pos_node_corr_indices, anc_node_corr_indices,
                      gt_node_corr_indices, gt_node_corr_overlaps,
                      n_anc, acceptance_overlap, *, max_q_block=512):
    q = pos_node_corr_indices.shape[0]
    g = gt_node_corr_indices.shape[0]

    # Fuse each (pos, anc) pair into a single int32 key and fold the overlap
    # threshold into the gt keys (sentinel -1 never matches).  Valid keys are
    # >= 0; int32 is safe for node counts well beyond realistic sizes.
    qkey = (pos_node_corr_indices.astype(jnp.int32) * n_anc
            + anc_node_corr_indices.astype(jnp.int32))
    gp = gt_node_corr_indices[:, 0].astype(jnp.int32)
    ga = gt_node_corr_indices[:, 1].astype(jnp.int32)
    gkey = jnp.where(gt_node_corr_overlaps > acceptance_overlap,
                     gp * n_anc + ga, jnp.int32(-1))

    # Lane-dense padding: G -> multiple of 128 (sentinel -1), Q -> multiple of
    # the Q tile (sentinel -2, never equal to -1 or any valid key).
    g_pad = _round_up(g, LANES)
    if g_pad != g:
        gkey = jnp.pad(gkey, (0, g_pad - g), constant_values=-1)
    q_block = min(max_q_block, _round_up(q, 8))
    q_pad = _round_up(q, q_block)
    if q_pad != q:
        qkey = jnp.pad(qkey, (0, q_pad - q), constant_values=-2)

    qk2 = qkey.reshape(q_pad, 1)
    gk2 = gkey.reshape(1, g_pad)
    n_blocks = q_pad // q_block

    out = pl.pallas_call(
        _coarse_precision_kernel,
        out_shape=jax.ShapeDtypeStruct((1, LANES), jnp.float32),
        grid_spec=pltpu.PrefetchScalarGridSpec(
            num_scalar_prefetch=0,
            grid=(n_blocks,),
            in_specs=[
                pl.BlockSpec((q_block, 1), lambda i: (i, 0)),
                pl.BlockSpec((1, g_pad), lambda i: (0, 0)),   # resident gt keys
            ],
            out_specs=pl.BlockSpec((1, LANES), lambda i: (0, 0)),
            scratch_shapes=[pltpu.VMEM((1, LANES), jnp.float32)],
        ),
        compiler_params=pltpu.CompilerParams(
            dimension_semantics=("arbitrary",)),
    )(qk2, gk2)
    # NOTE: q == 0 would give NaN, matching the reference .mean() behavior.
    return out[0, 0] / jnp.float32(q)


# ----------------------------------------------------------------------------
# IR (evaluate_fine): full-sublane per-coordinate panels, fused transform
# ----------------------------------------------------------------------------
def _fine_inlier_count_kernel(pos_ref, anc_ref, out_ref, acc_ref, *, radius_sq):
    i = pl.program_id(0)

    @pl.when(i == 0)
    def _init():
        acc_ref[...] = jnp.zeros_like(acc_ref)

    # pos_ref / anc_ref: (3, block_rows, 128) full-sublane coordinate panels.
    dx = pos_ref[0] - anc_ref[0]
    dy = pos_ref[1] - anc_ref[1]
    dz = pos_ref[2] - anc_ref[2]
    d2 = dx * dx + dy * dy + dz * dz                    # (block_rows, 128)
    # Padded lanes hold pos=0 / anc=1e6 -> d2 ~ 3e12 >> radius^2, so no mask.
    inl = jnp.where(d2 < radius_sq, 1.0, 0.0)
    acc_ref[...] += jnp.sum(inl, axis=0, keepdims=True)  # (1, 128) accumulator

    @pl.when(i == pl.num_programs(0) - 1)
    def _finalize():
        out_ref[...] = jnp.zeros((1, LANES), jnp.float32) + jnp.sum(acc_ref[...])


def _fine_inlier_ratio(pos_corr_points, anc_corr_points, transform,
                       acceptance_radius, *, max_block_rows=512):
    n = pos_corr_points.shape[0]
    r = transform[:3, :3].astype(jnp.float32)
    t = transform[:3, 3].astype(jnp.float32)
    # Fuse the rigid transform with the layout change: a single dot produces
    # the transformed anchor points directly in (3, N) kernel layout (no
    # separate (N,3) transform pass followed by a .T pass).
    anc_t3 = r @ anc_corr_points.astype(jnp.float32).T + t[:, None]   # (3, N)
    pos_t3 = pos_corr_points.astype(jnp.float32).T                     # (3, N)

    rows = pl.cdiv(n, LANES)
    block_rows = min(max_block_rows, _round_up(rows, 8))
    rows_p = _round_up(rows, block_rows)
    pad = rows_p * LANES - n
    # Pad pos with 0 and anc with a large constant so padded lanes can never
    # be inliers -> no in-kernel tail mask needed.
    pos3 = jnp.pad(pos_t3, ((0, 0), (0, pad))).reshape(3, rows_p, LANES)
    anc3 = jnp.pad(anc_t3, ((0, 0), (0, pad)),
                   constant_values=1e6).reshape(3, rows_p, LANES)
    n_blocks = rows_p // block_rows

    out = pl.pallas_call(
        functools.partial(_fine_inlier_count_kernel,
                          radius_sq=float(acceptance_radius) ** 2),
        out_shape=jax.ShapeDtypeStruct((1, LANES), jnp.float32),
        grid_spec=pltpu.PrefetchScalarGridSpec(
            num_scalar_prefetch=0,
            grid=(n_blocks,),
            in_specs=[
                pl.BlockSpec((3, block_rows, LANES), lambda i: (0, i, 0)),
                pl.BlockSpec((3, block_rows, LANES), lambda i: (0, i, 0)),
            ],
            out_specs=pl.BlockSpec((1, LANES), lambda i: (0, 0)),
            scratch_shapes=[pltpu.VMEM((1, LANES), jnp.float32)],
        ),
        compiler_params=pltpu.CompilerParams(
            dimension_semantics=("arbitrary",)),
    )(pos3, anc3)
    # NOTE: n == 0 would give NaN, matching the reference .mean() behavior.
    return out[0, 0] / jnp.float32(n)


# ----------------------------------------------------------------------------
# JAX glue shared by kernels and references
# ----------------------------------------------------------------------------
def apply_transform(points, transform):
    r = transform[:3, :3]
    t = transform[:3, 3]
    return points @ r.T + t


def isotropic_transform_error(gt_transform, est_transform):
    r_gt, t_gt = gt_transform[:3, :3], gt_transform[:3, 3]
    r_est, t_est = est_transform[:3, :3], est_transform[:3, 3]
    trace = jnp.trace(r_est @ r_gt.T)
    x = jnp.clip(0.5 * (trace - 1.0), -1.0, 1.0)
    rre = jnp.degrees(jnp.arccos(x))
    rte = jnp.linalg.norm(t_gt - t_est)
    return rre, rte


class Evaluator:
    """JAX/Pallas equivalent of the PyTorch Evaluator module."""

    def __init__(self, cfg):
        self.acceptance_overlap = cfg.eval.acceptance_overlap
        self.acceptance_radius = cfg.eval.acceptance_radius
        self.rre_threshold = cfg.eval.rre_threshold
        self.rte_threshold = cfg.eval.rte_threshold

    def evaluate_coarse(self, output_dict):
        return _coarse_precision(
            output_dict['pos_node_corr_indices'],
            output_dict['anc_node_corr_indices'],
            output_dict['gt_node_corr_indices'],
            output_dict['gt_node_corr_overlaps'],
            output_dict['anc_points_c'].shape[0],
            self.acceptance_overlap)

    def evaluate_fine(self, output_dict, data_dict):
        return _fine_inlier_ratio(output_dict['pos_corr_points'],
                                  output_dict['anc_corr_points'],
                                  data_dict['transform'],
                                  self.acceptance_radius)

    def evaluate_registration(self, output_dict, data_dict):
        # 4x4 scalar matrix math stays in plain JAX (no vectorizable work).
        rre, rte = isotropic_transform_error(
            data_dict['transform'], output_dict['estimated_transform'])
        recall = jnp.logical_and(rre < self.rre_threshold,
                                 rte < self.rte_threshold).astype(jnp.float32)
        return rre, rte, recall

    def forward(self, output_dict, data_dict):
        result = {}
        result['PIR'] = self.evaluate_coarse(output_dict)
        result['IR'] = self.evaluate_fine(output_dict, data_dict)
        rre, rte, recall = self.evaluate_registration(output_dict, data_dict)
        result['RRE'] = rre
        result['RTE'] = rte
        result['RR'] = recall
        return result

    __call__ = forward


# ----------------------------------------------------------------------------
# Pure-JAX references (correctness checks)
# ----------------------------------------------------------------------------
def _reference_evaluator(output_dict, data_dict, cfg):
    p = output_dict['pos_points_c'].shape[0]
    a = output_dict['anc_points_c'].shape[0]
    ovl = output_dict['gt_node_corr_overlaps']
    idx = output_dict['gt_node_corr_indices']
    masks = ovl > cfg.eval.acceptance_overlap
    safe_p = jnp.where(masks, idx[:, 0], p)
    safe_a = jnp.where(masks, idx[:, 1], a)
    gmap = jnp.zeros((p, a), jnp.float32).at[safe_p, safe_a].set(1.0, mode='drop')
    pir = gmap[output_dict['pos_node_corr_indices'],
               output_dict['anc_node_corr_indices']].mean()

    anc_t = apply_transform(output_dict['anc_corr_points'], data_dict['transform'])
    dist = jnp.linalg.norm(output_dict['pos_corr_points'] - anc_t, axis=1)
    ir = (dist < cfg.eval.acceptance_radius).astype(jnp.float32).mean()

    rre, rte = isotropic_transform_error(data_dict['transform'],
                                         output_dict['estimated_transform'])
    rr = jnp.logical_and(rre < cfg.eval.rre_threshold,
                         rte < cfg.eval.rte_threshold).astype(jnp.float32)
    return {'PIR': pir, 'IR': ir, 'RRE': rre, 'RTE': rte, 'RR': rr}


def _reference_loss(score, gt):
    log_p = jnp.maximum(jnp.log(score), -100.0)
    log_1mp = jnp.maximum(jnp.log(1.0 - score), -100.0)
    class_loss = -(gt * log_p + (1.0 - gt) * log_1mp)
    w_neg = gt.sum() / gt.shape[0]
    w_pos = 1.0 - w_neg
    weights = jnp.where(gt >= 0.5, w_pos, w_neg)
    return jnp.mean(weights * class_loss)


class _Namespace:
    def __init__(self, **kw):
        self.__dict__.update(kw)


if __name__ == "__main__":
    key = jax.random.PRNGKey(0)
    ks = jax.random.split(key, 10)

    n_pos, n_anc = 96, 160        # coarse node counts
    n_gt, n_q = 64, 100           # gt node correspondences / predicted pairs
    n_corr = 200                  # fine point correspondences

    cfg = _Namespace(eval=_Namespace(acceptance_overlap=0.1,
                                     acceptance_radius=0.1,
                                     rre_threshold=15.0,
                                     rte_threshold=0.3))

    pos_points_c = jax.random.normal(ks[0], (n_pos, 3), jnp.float32)
    anc_points_c = jax.random.normal(ks[1], (n_anc, 3), jnp.float32)

    gt_node_corr_indices = jnp.stack(
        [jax.random.randint(ks[2], (n_gt,), 0, n_pos),
         jax.random.randint(ks[3], (n_gt,), 0, n_anc)], axis=1)
    gt_node_corr_overlaps = jax.random.uniform(ks[4], (n_gt,), jnp.float32)

    # predicted node pairs: half copied from the gt list, half random
    pos_node_corr_indices = jnp.concatenate(
        [gt_node_corr_indices[:n_q // 2, 0],
         jax.random.randint(ks[5], (n_q - n_q // 2,), 0, n_pos)])
    anc_node_corr_indices = jnp.concatenate(
        [gt_node_corr_indices[:n_q // 2, 1],
         jax.random.randint(ks[6], (n_q - n_q // 2,), 0, n_anc)])

    # ground-truth transform (z-rotation + translation) and a close estimate
    c0, s0 = jnp.cos(0.30), jnp.sin(0.30)
    rot = jnp.array([[c0, -s0, 0.], [s0, c0, 0.], [0., 0., 1.]], jnp.float32)
    transform = (jnp.eye(4, dtype=jnp.float32)
                 .at[:3, :3].set(rot)
                 .at[:3, 3].set(jnp.array([0.1, -0.2, 0.3], jnp.float32)))
    c1, s1 = jnp.cos(0.33), jnp.sin(0.33)
    rot_e = jnp.array([[c1, -s1, 0.], [s1, c1, 0.], [0., 0., 1.]], jnp.float32)
    estimated_transform = (jnp.eye(4, dtype=jnp.float32)
                           .at[:3, :3].set(rot_e)
                           .at[:3, 3].set(jnp.array([0.12, -0.21, 0.29], jnp.float32)))

    # fine correspondences: half clear inliers, half clear outliers
    anc_corr_points = jax.random.normal(ks[7], (n_corr, 3), jnp.float32)
    noise = jax.random.normal(ks[8], (n_corr, 3), jnp.float32)
    scale = jnp.where(jnp.arange(n_corr)[:, None] < n_corr // 2, 0.01, 1.0)
    pos_corr_points = apply_transform(anc_corr_points, transform) + scale * noise

    # node-overlap scores for the weighted-BCE loss kernel
    score = jax.nn.sigmoid(jax.random.normal(ks[9], (n_pos + n_anc,), jnp.float32))

    output_dict = {
        'pos_points_c': pos_points_c,
        'anc_points_c': anc_points_c,
        'gt_node_corr_indices': gt_node_corr_indices,
        'gt_node_corr_overlaps': gt_node_corr_overlaps,
        'pos_node_corr_indices': pos_node_corr_indices,
        'anc_node_corr_indices': anc_node_corr_indices,
        'pos_corr_points': pos_corr_points,
        'anc_corr_points': anc_corr_points,
        'estimated_transform': estimated_transform,
        'score': score,
    }
    data_dict = {'transform': transform}

    evaluator = Evaluator(cfg)
    result = jax.block_until_ready(evaluator(output_dict, data_dict))

    ref = _reference_evaluator(output_dict, data_dict, cfg)
    for k in ('PIR', 'IR', 'RRE', 'RTE', 'RR'):
        assert jnp.allclose(result[k], ref[k], rtol=1e-5, atol=1e-6), \
            (k, result[k], ref[k])

    # weighted-BCE node-overlap loss kernel
    loss = jax.block_until_ready(node_overlap_loss(output_dict))
    pos_gt = jnp.zeros((n_pos,), jnp.float32).at[gt_node_corr_indices[:, 0]].set(1.0)
    anc_gt = jnp.zeros((n_anc,), jnp.float32).at[gt_node_corr_indices[:, 1]].set(1.0)
    loss_ref = _reference_loss(score, jnp.concatenate([pos_gt, anc_gt]))
    assert jnp.allclose(loss, loss_ref, rtol=1e-4, atol=1e-6), (loss, loss_ref)

    print("KERNEL_OK")
</pallas_src>

<mosaic_0001>
module attributes {stable_mosaic.version = 11 : i64} {
  func.func @_coarse_precision_kernel(%arg0: i32, %arg1: memref<104x1xi32, #tpu.memory_space<vmem>>, %arg2: memref<1x128xi32, #tpu.memory_space<vmem>>, %arg3: memref<1x128xf32, #tpu.memory_space<vmem>>, %arg4: memref<1x128xf32, #tpu.memory_space<vmem>>) attributes {dimension_semantics = [#tpu.dimension_semantics<arbitrary>], iteration_bounds = array<i64: 1>, scalar_prefetch = 0 : i64, scratch_operands = 1 : i64, tpu.core_type = #tpu.core_type<tc>, window_params = [{transform_indices = @transform_0, window_bounds = array<i64: 104, 1>}, {pipeline_mode = #tpu.pipeline_mode<synchronous>, transform_indices = @transform_1, window_bounds = array<i64: 1, 128>}, {pipeline_mode = #tpu.pipeline_mode<synchronous>, transform_indices = @transform_2, window_bounds = array<i64: 1, 128>}]} {
    %c0_i32 = arith.constant 0 : i32
    %0 = arith.cmpi eq, %arg0, %c0_i32 : i32
    %1 = arith.extui %0 : i1 to i32
    %c0_i32_0 = arith.constant 0 : i32
    %2 = arith.cmpi ne, %1, %c0_i32_0 : i32
    scf.if %2 {
      %cst_11 = arith.constant 0.000000e+00 : f32
      %23 = vector.broadcast %cst_11 : f32 to vector<1x128xf32>
      %c0_12 = arith.constant 0 : index
      %c0_13 = arith.constant 0 : index
      %24 = vector.load %arg4[%c0_12, %c0_13] : memref<1x128xf32, #tpu.memory_space<vmem>>, vector<1x128xf32>
      tpu.vector_store %arg4[%c0_12, %c0_13], %23 {strides = array<i32>} : memref<1x128xf32, #tpu.memory_space<vmem>>, vector<1x128xf32>,
    } else {
    }
    %c0 = arith.constant 0 : index
    %c0_1 = arith.constant 0 : index
    %3 = vector.load %arg1[%c0, %c0_1] : memref<104x1xi32, #tpu.memory_space<vmem>>, vector<104x1xi32>
    %c0_2 = arith.constant 0 : index
    %c0_3 = arith.constant 0 : index
    %4 = vector.load %arg2[%c0_2, %c0_3] : memref<1x128xi32, #tpu.memory_space<vmem>>, vector<1x128xi32>
    %5 = vector.broadcast %3 : vector<104x1xi32> to vector<104x128xi32>
    %6 = vector.broadcast %4 : vector<1x128xi32> to vector<104x128xi32>
    %7 = arith.cmpi eq, %5, %6 : vector<104x128xi32>
    %8 = arith.extui %7 : vector<104x128xi1> to vector<104x128xi32>
    %9 = arith.sitofp %8 : vector<104x128xi32> to vector<104x128xf32>
    %cst = arith.constant dense<0xFF800000> : vector<104xf32>
    %10 = vector.multi_reduction <maximumf>, %9, %cst [1] : vector<104x128xf32> to vector<104xf32>
    %11 = vector.shape_cast %10 : vector<104xf32> to vector<104x1xf32>
    %c0_4 = arith.constant 0 : index
    %c0_5 = arith.constant 0 : index
    %12 = vector.load %arg4[%c0_4, %c0_5] : memref<1x128xf32, #tpu.memory_space<vmem>>, vector<1x128xf32>
    %13 = vector.shape_cast %11 : vector<104x1xf32> to vector<1x104x1xf32>
    %cst_6 = arith.constant dense<0.000000e+00> : vector<1xf32>
    %14 = vector.multi_reduction <add>, %13, %cst_6 [1, 2] : vector<1x104x1xf32> to vector<1xf32>
    %15 = vector.shape_cast %14 : vector<1xf32> to vector<1x1x1xf32>
    %16 = vector.extract %15[0, 0, 0] : f32 from vector<1x1x1xf32>
    %17 = vector.broadcast %16 : f32 to vector<1x128xf32>
    %18 = arith.addf %12, %17 : vector<1x128xf32>
    %c0_7 = arith.constant 0 : index
    %c0_8 = arith.constant 0 : index
    %19 = vector.load %arg4[%c0_7, %c0_8] : memref<1x128xf32, #tpu.memory_space<vmem>>, vector<1x128xf32>
    tpu.vector_store %arg4[%c0_7, %c0_8], %18 {strides = array<i32>} : memref<1x128xf32, #tpu.memory_space<vmem>>, vector<1x128xf32>,
    %c0_i32_9 = arith.constant 0 : i32
    %20 = arith.cmpi eq, %arg0, %c0_i32_9 : i32
    %21 = arith.extui %20 : i1 to i32
    %c0_i32_10 = arith.constant 0 : i32
    %22 = arith.cmpi ne, %21, %c0_i32_10 : i32
    scf.if %22 {
      %c0_11 = arith.constant 0 : index
      %c0_12 = arith.constant 0 : index
      %23 = vector.load %arg4[%c0_11, %c0_12] : memref<1x128xf32, #tpu.memory_space<vmem>>, vector<1x128xf32>
      %c0_13 = arith.constant 0 : index
      %c0_14 = arith.constant 0 : index
      %24 = vector.load %arg3[%c0_13, %c0_14] : memref<1x128xf32, #tpu.memory_space<vmem>>, vector<1x128xf32>
      tpu.vector_store %arg3[%c0_13, %c0_14], %23 {strides = array<i32>} : memref<1x128xf32, #tpu.memory_space<vmem>>, vector<1x128xf32>,
    } else {
    }
    return
  }
  func.func @transform_0(%arg0: i32) -> (i32, i32) {
    %c0_i32 = arith.constant 0 : i32
    %c0_i32_0 = arith.constant 0 : i32
    return %arg0, %c0_i32 : i32, i32
  }
  func.func @transform_1(%arg0: i32) -> (i32, i32) {
    %c0_i32 = arith.constant 0 : i32
    %c0_i32_0 = arith.constant 0 : i32
    %c0_i32_1 = arith.constant 0 : i32
    return %c0_i32, %c0_i32_0 : i32, i32
  }
  func.func @transform_2(%arg0: i32) -> (i32, i32) {
    %c0_i32 = arith.constant 0 : i32
    %c0_i32_0 = arith.constant 0 : i32
    %c0_i32_1 = arith.constant 0 : i32
    return %c0_i32, %c0_i32_0 : i32, i32
  }
}

</mosaic_0001>

<bundles_post_ra>
// kernel: tpu_custom_call.1
= control target key start
LH: loop header
LB: loop body
LE: loop exit
PB: predicated region body
PF: predicated region fallthrough
CT: control target
= control target key end

     0   :  { %v242_v2 = vmov 0   ;;  %v243_v5 = vmov 0.0   ;;  %s341_s0 = inlined_call_operand.vmem [shape: s32[104,1], index: 0, kind: input, shape index: {}]   ;;  %s342_s1 = inlined_call_operand.vmem [shape: s32[1,128], index: 1, kind: input, shape index: {}]   ;;  %s343_s2 = inlined_call_operand.hbm [shape: f32[1,128], index: 2, kind: output, shape index: {}]  }
   0x1   :  { %v19_v0 = vld [vmem:[%s341_s0 + $0x10] sm:$0xff]  ;;  %v17_v1 = vld [vmem:[%s341_s0] sm:$0xff]  ;;  %217 = vset.pattern.permute.xlu1 %v242_v2  ;;  %216 = vset.pattern.permute.xlu0 %v242_v2  ;;  %v20_v3 = vld [vmem:[%s341_s0 + $0x18] sm:$0xff]  ;;  %16 = vst [vmem:[#allocation2] sm:$0x1] %v243_v5 }
   0x2   :  { %38 = vperm.xlu1 %217, %v19_v0   ;;  %32 = vperm.xlu0 %216, %v17_v1   ;;  %v18_v4 = vld [vmem:[%s341_s0 + $0x8] sm:$0xff] }
   0x3   :  { %7 = vsyncpa [#allocation4], 0  ;;  %v22_v6 = vld [vmem:[%s341_s0 + $0x28] sm:$0xff]  ;;  %v21_v7 = vld [vmem:[%s341_s0 + $0x20] sm:$0xff]  ;;  %vm140_vm13 = vcmask 7168  }
   0x4   :  { %v24_v8 = vld [vmem:[%s341_s0 + $0x38] sm:$0xff]  ;;  %v23_v9 = vld [vmem:[%s341_s0 + $0x30] sm:$0xff]  ;;  %v26_v10 = vld [vmem:[%s341_s0 + $0x48] sm:$0xff] }
   0x5   :  { %v25_v11 = vld [vmem:[%s341_s0 + $0x40] sm:$0xff]  ;;  %v28_v12 = vld [vmem:[%s341_s0 + $0x58] sm:$0xff]  ;;  %v27_v13 = vld [vmem:[%s341_s0 + $0x50] sm:$0xff] }
   0x6   :  { %41 = vperm.xlu1 %217, %v20_v3   ;;  %35 = vperm.xlu0 %216, %v18_v4   ;;  %v29_v14 = vld [vmem:[%s341_s0 + $0x60] sm:$0xff] }
   0x7   :  { %v197_v15 = vld [vmem:[%s342_s1] ss:$0 sm:$0xff]  ;;  %s244_s1 = smov [#allocation3]  }
   0x8   :  { %s189_s9 = sshll.u32 %s244_s1, 4  ;;  %s190_s9 = int_to_ptr.vmem [resolvable:$true] %s189_s9 }
   0x9   :  { %s218_s10 = scalar_lea.vmem %s190_s9, 16  ;;  %s222_s11 = scalar_lea.vmem %s190_s9, 32 }
   0xa   :  { %47 = vperm.xlu1 %217, %v22_v6   ;;  %44 = vperm.xlu0 %216, %v21_v7   ;;  %p219_p0 = scmp.ne.s32.totalorder %s190_s9, %s218_s10  ;;  %p223_p1 = scmp.lt.s32.totalorder %s190_s9, %s190_s9 }
   0xb   :  { %p224_p2 = scmp.lt.s32.totalorder %s222_s11, %s218_s10 }
   0xd   :  { %p225_p3 = por %p224_p2, %p223_p1 }
   0xe   :  { %53 = vperm.xlu1 %217, %v24_v8   ;;  %50 = vperm.xlu0 %216, %v23_v9  }
   0xf   :  { %p226_p4 = pnand %p225_p3, %p219_p0 }
  0x12   :  { %59 = vperm.xlu1 %217, %v26_v10   ;;  %56 = vperm.xlu0 %216, %v25_v11  }
  0x16   :  { %65 = vperm.xlu1 %217, %v28_v12   ;;  %62 = vperm.xlu0 %216, %v27_v13  }
  0x1a   :  { %68 = vperm.xlu0 %216, %v29_v14  }
  0x81   :  { %v39_v16 = vpop.permute.xlu1 %38  ;;  %v33_v17 = vpop.permute.xlu0 %32 }
  0x82   :  { %vm74_vm0 = vcmp.eq.s32.totalorder %v33_v17, %v197_v15  ;;  %vm76_vm3 = vcmp.eq.s32.totalorder %v39_v16, %v197_v15 }
  0x83   :  { %v198_v18 = vsel %vm74_vm0, 1.0, %v243_v5  ;;  %v200_v25 = vsel %vm76_vm3, 1.0, %v243_v5 }
  0x84   :  { %113 = vmax.xlane.f32.xlu1 %v198_v18 }
  0x85   :  { %v42_v19 = vpop.permute.xlu1 %41  ;;  %v36_v20 = vpop.permute.xlu0 %35 }
  0x86   :  { %vm77_vm1 = vcmp.eq.s32.totalorder %v42_v19, %v197_v15  ;;  %vm75_vm2 = vcmp.eq.s32.totalorder %v36_v20, %v197_v15 }
  0x87   :  { %v199_v21 = vsel %vm75_vm2, 1.0, %v243_v5  ;;  %v201_v22 = vsel %vm77_vm1, 1.0, %v243_v5 }
  0x88   :  { %115 = vmax.xlane.f32.xlu0 %v199_v21  ;;  %119 = vmax.xlane.f32.xlu1 %v201_v22 }
  0x89   :  { %v48_v23 = vpop.permute.xlu1 %47  ;;  %v45_v24 = vpop.permute.xlu0 %44 }
  0x8a   :  { %vm79_vm4 = vcmp.eq.s32.totalorder %v48_v23, %v197_v15  ;;  %vm78_vm5 = vcmp.eq.s32.totalorder %v45_v24, %v197_v15  ;;  %v139_v23 = vld [vmem:[#allocation2] sm:$0x1] }
  0x8b   :  { %v203_v26 = vsel %vm79_vm4, 1.0, %v243_v5  ;;  %v202_v29 = vsel %vm78_vm5, 1.0, %v243_v5 }
  0x8c   :  { %117 = vmax.xlane.f32.xlu0 %v200_v25  ;;  %123 = vmax.xlane.f32.xlu1 %v203_v26 }
  0x8d   :  { %v54_v27 = vpop.permute.xlu1 %53  ;;  %v51_v28 = vpop.permute.xlu0 %50 }
  0x8e   :  { %vm81_vm6 = vcmp.eq.s32.totalorder %v54_v27, %v197_v15  ;;  %vm80_vm7 = vcmp.eq.s32.totalorder %v51_v28, %v197_v15 }
  0x8f   :  { %v205_v30 = vsel %vm81_vm6, 1.0, %v243_v5  ;;  %v204_v33 = vsel %vm80_vm7, 1.0, %v243_v5 }
  0x90   :  { %121 = vmax.xlane.f32.xlu0 %v202_v29  ;;  %127 = vmax.xlane.f32.xlu1 %v205_v30 }
  0x91   :  { %v60_v31 = vpop.permute.xlu1 %59  ;;  %v57_v32 = vpop.permute.xlu0 %56 }
  0x92   :  { %vm83_vm8 = vcmp.eq.s32.totalorder %v60_v31, %v197_v15  ;;  %vm82_vm9 = vcmp.eq.s32.totalorder %v57_v32, %v197_v15 }
  0x93   :  { %v207_v34 = vsel %vm83_vm8, 1.0, %v243_v5  ;;  %v206_v37 = vsel %vm82_vm9, 1.0, %v243_v5 }
  0x94   :  { %125 = vmax.xlane.f32.xlu0 %v204_v33  ;;  %131 = vmax.xlane.f32.xlu1 %v207_v34 }
  0x95   :  { %v66_v35 = vpop.permute.xlu1 %65  ;;  %v63_v36 = vpop.permute.xlu0 %62 }
  0x96   :  { %vm85_vm10 = vcmp.eq.s32.totalorder %v66_v35, %v197_v15  ;;  %vm84_vm11 = vcmp.eq.s32.totalorder %v63_v36, %v197_v15 }
  0x97   :  { %v209_v38 = vsel %vm85_vm10, 1.0, %v243_v5  ;;  %v208_v40 = vsel %vm84_vm11, 1.0, %v243_v5 }
  0x98   :  { %129 = vmax.xlane.f32.xlu0 %v206_v37  ;;  %135 = vmax.xlane.f32.xlu1 %v209_v38 }
  0x99   :  { %v69_v39 = vpop.permute.xlu0 %68 }
  0x9a   :  { %vm86_vm12 = vcmp.eq.s32.totalorder %v69_v39, %v197_v15 }
  0x9b   :  { %v210_v41 = vsel %vm86_vm12, 1.0, %v243_v5 }
  0x9c   :  { %133 = vmax.xlane.f32.xlu0 %v208_v40 }
  0xa0   :  { %137 = vmax.xlane.f32.xlu0 %v210_v41 }
 0x111   :  { %v114_v42 = vpop.xlane.xlu1 %113 }
 0x112   :  { %v141_v46 = vsel %vm140_vm13, %v114_v42, 0.0 }
 0x115   :  { %v116_v43 = vpop.xlane.xlu0 %115  ;;  %v120_v44 = vpop.xlane.xlu1 %119 }
 0x116   :  { %v142_v45 = vsel %vm140_vm13, %v116_v43, 0.0  ;;  %v146_v52 = vsel %vm140_vm13, %v120_v44, 0.0 }
 0x117   :  { %v143_v47 = vadd.f32 %v142_v45, %v141_v46 }
 0x119   :  { %v118_v48 = vpop.xlane.xlu0 %117  ;;  %v124_v49 = vpop.xlane.xlu1 %123 }
 0x11a   :  { %v144_v50 = vsel %vm140_vm13, %v118_v48, 0.0  ;;  %v150_v58 = vsel %vm140_vm13, %v124_v49, 0.0 }
 0x11b   :  { %v145_v51 = vadd.f32 %v144_v50, %v143_v47 }
 0x11d   :  { %v122_v53 = vpop.xlane.xlu0 %121  ;;  %v147_v54 = vadd.f32 %v146_v52, %v145_v51  ;;  %v128_v55 = vpop.xlane.xlu1 %127 }
 0x11e   :  { %v148_v56 = vsel %vm140_vm13, %v122_v53, 0.0  ;;  %v154_v0 = vsel %vm140_vm13, %v128_v55, 0.0 }
 0x11f   :  { %v149_v57 = vadd.f32 %v148_v56, %v147_v54 }
 0x121   :  { %v126_v59 = vpop.xlane.xlu0 %125  ;;  %v151_v60 = vadd.f32 %v150_v58, %v149_v57  ;;  %v132_v63 = vpop.xlane.xlu1 %131 }
 0x122   :  { %v152_v61 = vsel %vm140_vm13, %v126_v59, 0.0  ;;  %v158_v5 = vsel %vm140_vm13, %v132_v63, 0.0 }
 0x123   :  { %v153_v62 = vadd.f32 %v152_v61, %v151_v60 }
 0x125   :  { %v130_v1 = vpop.xlane.xlu0 %129  ;;  %v155_v2 = vadd.f32 %v154_v0, %v153_v62  ;;  %v136_v6 = vpop.xlane.xlu1 %135 }
 0x126   :  { %v156_v3 = vsel %vm140_vm13, %v130_v1, 0.0  ;;  %v162_v11 = vsel %vm140_vm13, %v136_v6, 0.0 }
 0x127   :  { %v157_v4 = vadd.f32 %v156_v3, %v155_v2 }
 0x129   :  { %v134_v7 = vpop.xlane.xlu0 %133  ;;  %v159_v8 = vadd.f32 %v158_v5, %v157_v4 }
 0x12a   :  { %v160_v9 = vsel %vm140_vm13, %v134_v7, 0.0 }
 0x12b   :  { %v161_v10 = vadd.f32 %v160_v9, %v159_v8 }
 0x12d   :  { %v138_v12 = vpop.xlane.xlu0 %137  ;;  %v163_v13 = vadd.f32 %v162_v11, %v161_v10 }
 0x12e   :  { %v164_v14 = vsel %vm140_vm13, %v138_v12, 0.0 }
 0x12f   :  { %v165_v15 = vadd.f32 %v164_v14, %v163_v13 }
 0x131   :  { %166 = vadd.xlane.f32.xlu1 %v165_v15 }
 0x1be   :  { %v167_v16 = vpop.xlane.xlu1 %166 }
 0x1bf   :  { %v168_v17 = vrot.slane %v167_v16, 4 }
 0x1c1   :  { %v169_v18 = vadd.f32 %v168_v17, %v167_v16 }
 0x1c3   :  { %v170_v19 = vrot.slane %v169_v18, 2 }
 0x1c5   :  { %v171_v20 = vadd.f32 %v170_v19, %v169_v18 }
 0x1c7   :  { %v172_v21 = vrot.slane %v171_v20, 1 }
 0x1c9   :  { %v173_v22 = vadd.f32 %v172_v21, %v171_v20 }
 0x1cb   :  { %211 = vpush %v173_v22 }
 0x1fc   :  { %s212_s0 = spop %211 }
 0x1fd   :  { %v175_v24 = vstv %s212_s0 }
 0x1fe   :  { %v176_v25 = vadd.f32 %v175_v24, %v139_v23 }
 0x200   :  { %177 = vst [vmem:[#allocation2] sm:$0x1] %v176_v25 }
 0x207   :  { %v181_v26 = vld [vmem:[#allocation2] sm:$0x1] }
 0x208   :  { %182 = vst [vmem:[#allocation3] sm:$0x1] %v181_v26 }
 0x209   :  { %229 = shalt.err (!%p226_p4)
}
 0x20a   :  { %s230_s14 = scalar_lea.hbm %s343_s2, 16 }
 0x20b   :  { %p231_p5 = scmp.ne.s32.totalorder %s343_s2, %s230_s14  ;;  %p234_p6 = scmp.lt.u32.totalorder %s230_s14, %s343_s2 }
 0x20d   :  { %p236_p7 = pnand %p234_p6, %p231_p5 }
 0x20f   :  { %239 = shalt.err (!%p236_p7)
}
 0x210   :  { %192 = dma.vmem_to_hbm [thread:$0]  %s190_s9, 16, %s343_s2, [#allocation4]  }
 0x211   :  { %240 = dma.done.wait [#allocation4], 16  }
 0x212   :  { %241 = vsyncadd [#allocation4], 4294967280 }
 0x213   :  { %196 = vsyncpa [#allocation4], 1 }

</bundles_post_ra>
